<compile_context>
chip_gen: v5e
topology: v5e:2x2
jax: 0.10.0
libtpu: 0.0.40
codegen_flags: <defaults>
</compile_context>

<pallas_src>
from functools import partial

import jax
import jax.numpy as jnp
from jax.experimental import pallas as pl
from jax.experimental.pallas import tpu as pltpu

HIDDEN = 128


def net_forward_kernel(x_ref, w1_ref, b1_ref, w2_ref, b2_ref,
                       logits_ref, values_ref):
    # x: (tile_b, s_dim); w1: (s_dim, 256); b1: (1, 256)
    # w2: (256, head_w); b2: (1, head_w)
    # logits: (tile_b, a_dim); values: (tile_b, 1)
    a_dim = logits_ref.shape[-1]

    # Cast x to the matmul dtype AFTER the load (free on VPU slack); the
    # wrapper never rewrites x, so there is no extra HBM pass over it.
    x = x_ref[...].astype(w1_ref.dtype)

    # Fused hidden layer for both branches: one MXU pass, f32 accumulation,
    # f32 bias add.  tanh runs in the matmul dtype (bf16 EUP path on v6e/v7x;
    # a no-op cast on the f32 path) because h feeds the second MXU pass in
    # that dtype anyway.
    pre = jnp.dot(x, w1_ref[...], preferred_element_type=jnp.float32) + b1_ref[...]
    h = jnp.tanh(pre.astype(w2_ref.dtype))

    # Fused (block-diagonal) head: logits land in lanes [0:a_dim], the value
    # in lane a_dim; padding lanes of w2/b2 are zero.
    out = jnp.dot(h, w2_ref[...], preferred_element_type=jnp.float32) + b2_ref[...]

    # Narrow stores: only the live lanes go back to HBM.
    logits_ref[...] = out[:, :a_dim].astype(logits_ref.dtype)
    values_ref[...] = out[:, a_dim:a_dim + 1].astype(values_ref.dtype)
    # TODO(synk): choose_action softmax prep (per-group max/exp/sum over the
    # logit lanes) could be fused here as an epilogue to amortize tiny-batch
    # launch cost; Categorical sampling / loss_func stay host/JAX-side.


def make_net_params(s_dim, a_dim, hidden=HIDDEN, seed=0):
    """Deterministic init matching set_init: weights ~ N(0, 0.1), biases = 0.

    Weights are stored pre-transposed as (in_features, out_features); biases
    as (1, out_features).
    """
    key = jax.random.PRNGKey(seed)
    k1, k2, k3, k4 = jax.random.split(key, 4)
    std = 0.1
    return {
        "pi1_w": std * jax.random.normal(k1, (s_dim, hidden), jnp.float32),
        "pi1_b": jnp.zeros((1, hidden), jnp.float32),
        "pi2_w": std * jax.random.normal(k2, (hidden, a_dim), jnp.float32),
        "pi2_b": jnp.zeros((1, a_dim), jnp.float32),
        "v1_w": std * jax.random.normal(k3, (s_dim, hidden), jnp.float32),
        "v1_b": jnp.zeros((1, hidden), jnp.float32),
        "v2_w": std * jax.random.normal(k4, (hidden, 1), jnp.float32),
        "v2_b": jnp.zeros((1, 1), jnp.float32),
    }


def default_matmul_dtype():
    """bf16 weights for the MXU on v6e/v7x (full-rate MXU, halved weight DMA);
    f32 on v5e and older generations (no bf16 VPU/EUP path)."""
    try:
        kind = jax.devices()[0].device_kind.lower()
    except Exception:
        return jnp.float32
    for old in ("v2", "v3", "v4", "v5"):
        if old in kind:
            return jnp.float32
    return jnp.bfloat16


def fuse_net_params(params, matmul_dtype=None):
    """One-time (outside the kernel) fusion of the per-branch weights.

    Returns (w1, b1, w2, b2):
      w1: (s_dim, 2*hidden)    -- [pi1 | v1], matmul dtype
      b1: (1, 2*hidden)        -- f32
      w2: (2*hidden, head_w)   -- block-diagonal [pi2 ; v2], zero-padded,
                                  matmul dtype
      b2: (1, head_w)          -- f32
    head_w = a_dim + 1 rounded up to a multiple of 128 (>= 128).
    """
    if matmul_dtype is None:
        matmul_dtype = default_matmul_dtype()

    pi2_w = params["pi2_w"]            # (hidden, a_dim)
    v2_w = params["v2_w"]              # (hidden, 1)
    hidden, a_dim = pi2_w.shape
    head_w = max(128, ((a_dim + 1 + 127) // 128) * 128)

    w1 = jnp.concatenate([params["pi1_w"], params["v1_w"]], axis=1)
    b1 = jnp.concatenate([params["pi1_b"], params["v1_b"]], axis=1)

    w2 = jnp.zeros((2 * hidden, head_w), jnp.float32)
    w2 = w2.at[:hidden, :a_dim].set(pi2_w)
    w2 = w2.at[hidden:, a_dim:a_dim + 1].set(v2_w)

    b2 = jnp.zeros((1, head_w), jnp.float32)
    b2 = b2.at[:, :a_dim].set(params["pi2_b"])
    b2 = b2.at[:, a_dim:a_dim + 1].set(params["v2_b"])

    return (w1.astype(matmul_dtype), b1.astype(jnp.float32),
            w2.astype(matmul_dtype), b2.astype(jnp.float32))


def _pick_batch_tile(batch, per_row_bytes, vmem_budget_bytes=12 << 20):
    """Batch-tile chooser (review opts 3-6).

    * batch <= 16: single block -- a TPU grid is a serial loop; extra steps
      are pure overhead at inference-sized batches.
    * otherwise: largest candidate tile that (a) divides the batch,
      (b) leaves >= 2 grid programs so the "parallel" batch axis can shard
      across the two v7x TensorCores, and (c) keeps the per-step VMEM
      footprint under the budget (conservative for v7x's 64 MiB VMEM /
      32 MiB scoped default; v5e/v6e have far more headroom).
    """
    if batch <= 16:
        return batch
    max_rows = max(8, vmem_budget_bytes // max(per_row_bytes, 1))
    for t in (16384, 8192, 4096, 2048, 1024, 512, 256, 128, 64, 32, 16, 8):
        if t <= max_rows and 2 * t <= batch and batch % t == 0:
            return t
    # No suitable divisor: one full-array block (correct, but disables
    # megacore sharding; callers with odd large batches should pad).
    return batch


@partial(jax.jit, static_argnames=("a_dim",))
def net_forward(x, w1, b1, w2, b2, *, a_dim):
    """Returns (logits (B, a_dim), values (B, 1)) like Net.forward."""
    B, s_dim = x.shape
    h2 = w1.shape[1]          # 2 * hidden = 256
    head_w = w2.shape[1]      # padded head width (>= 128)

    # Per-row VMEM: double-buffered streaming IO + live compute temporaries.
    per_row_bytes = (
        2 * (s_dim * x.dtype.itemsize + (a_dim + 1) * 4)     # x + narrow outs
        + h2 * 4 + h2 * w1.dtype.itemsize + head_w * 4        # pre, h, head out
    )
    tile_b = _pick_batch_tile(B, per_row_bytes)
    grid = (B // tile_b,)

    flops = 2 * B * (s_dim * h2 + h2 * head_w)
    transcendentals = B * h2
    bytes_accessed = (
        x.size * x.dtype.itemsize
        + w1.size * w1.dtype.itemsize + b1.size * b1.dtype.itemsize
        + w2.size * w2.dtype.itemsize + b2.size * b2.dtype.itemsize
        + B * (a_dim + 1) * 4
    )

    logits, values = pl.pallas_call(
        net_forward_kernel,
        out_shape=(
            jax.ShapeDtypeStruct((B, a_dim), jnp.float32),
            jax.ShapeDtypeStruct((B, 1), jnp.float32),
        ),
        grid=grid,
        in_specs=[
            pl.BlockSpec((tile_b, s_dim), lambda i: (i, 0)),
            pl.BlockSpec((s_dim, h2), lambda i: (0, 0)),
            pl.BlockSpec((1, h2), lambda i: (0, 0)),
            pl.BlockSpec((2 * HIDDEN, head_w), lambda i: (0, 0)),
            pl.BlockSpec((1, head_w), lambda i: (0, 0)),
        ],
        out_specs=(
            pl.BlockSpec((tile_b, a_dim), lambda i: (i, 0)),
            pl.BlockSpec((tile_b, 1), lambda i: (i, 0)),
        ),
        compiler_params=pltpu.CompilerParams(
            dimension_semantics=("parallel",)),
        cost_estimate=pl.CostEstimate(
            flops=flops,
            transcendentals=transcendentals,
            bytes_accessed=bytes_accessed),
    )(x, w1, b1, w2, b2)

    return logits, values


def net_forward_ref(x, params):
    """Pure-JAX reference (unfused), matching the PyTorch forward."""
    h_pi = jnp.tanh(x @ params["pi1_w"] + params["pi1_b"])
    logits = h_pi @ params["pi2_w"] + params["pi2_b"]
    h_v = jnp.tanh(x @ params["v1_w"] + params["v1_b"])
    values = h_v @ params["v2_w"] + params["v2_b"]
    return logits, values


if __name__ == "__main__":
    # Small shapes consistent with the module: state dim 8, action dim 10
    # (2 * max_charging_rate, matching the softmax split in choose_action).
    B, S_DIM, A_DIM = 4, 8, 10

    key = jax.random.PRNGKey(0)
    x = jax.random.normal(key, (B, S_DIM), jnp.float32)

    params = make_net_params(S_DIM, A_DIM, hidden=HIDDEN, seed=0)
    logits_ref, values_ref = net_forward_ref(x, params)

    # 1) Strict correctness check on the f32 MXU path.
    w1, b1, w2, b2 = fuse_net_params(params, matmul_dtype=jnp.float32)
    logits, values = net_forward(x, w1, b1, w2, b2, a_dim=A_DIM)
    jax.block_until_ready((logits, values))
    assert logits.shape == (B, A_DIM)
    assert values.shape == (B, 1)
    assert jnp.allclose(logits, logits_ref, atol=1e-5, rtol=1e-5)
    assert jnp.allclose(values, values_ref, atol=1e-5, rtol=1e-5)

    # 2) Recommended fast path (bf16 weights / in-kernel cast on v6e/v7x;
    #    automatically falls back to f32 on v5e and older).
    fast_dtype = default_matmul_dtype()
    w1f, b1f, w2f, b2f = fuse_net_params(params, matmul_dtype=fast_dtype)
    logits_f, values_f = net_forward(x, w1f, b1f, w2f, b2f, a_dim=A_DIM)
    jax.block_until_ready((logits_f, values_f))
    assert jnp.allclose(logits_f, logits_ref, atol=3e-2, rtol=3e-2)
    assert jnp.allclose(values_f, values_ref, atol=3e-2, rtol=3e-2)

    print("KERNEL_OK")
</pallas_src>

<mosaic_0001>
module attributes {stable_mosaic.version = 11 : i64} {
  func.func @net_forward_kernel(%arg0: i32, %arg1: memref<4x8xf32, #tpu.memory_space<vmem>>, %arg2: memref<8x256xf32, #tpu.memory_space<vmem>>, %arg3: memref<1x256xf32, #tpu.memory_space<vmem>>, %arg4: memref<256x128xf32, #tpu.memory_space<vmem>>, %arg5: memref<1x128xf32, #tpu.memory_space<vmem>>, %arg6: memref<4x10xf32, #tpu.memory_space<vmem>>, %arg7: memref<4x1xf32, #tpu.memory_space<vmem>>) attributes {dimension_semantics = [#tpu.dimension_semantics<parallel>], iteration_bounds = array<i64: 1>, scalar_prefetch = 0 : i64, scratch_operands = 0 : i64, tpu.core_type = #tpu.core_type<tc>, window_params = [{transform_indices = @transform_0, window_bounds = array<i64: 4, 8>}, {pipeline_mode = #tpu.pipeline_mode<synchronous>, transform_indices = @transform_1, window_bounds = array<i64: 8, 256>}, {pipeline_mode = #tpu.pipeline_mode<synchronous>, transform_indices = @transform_2, window_bounds = array<i64: 1, 256>}, {pipeline_mode = #tpu.pipeline_mode<synchronous>, transform_indices = @transform_3, window_bounds = array<i64: 256, 128>}, {pipeline_mode = #tpu.pipeline_mode<synchronous>, transform_indices = @transform_4, window_bounds = array<i64: 1, 128>}, {transform_indices = @transform_5, window_bounds = array<i64: 4, 10>}, {transform_indices = @transform_6, window_bounds = array<i64: 4, 1>}]} {
    %c0 = arith.constant 0 : index
    %c0_0 = arith.constant 0 : index
    %0 = vector.load %arg1[%c0, %c0_0] : memref<4x8xf32, #tpu.memory_space<vmem>>, vector<4x8xf32>
    %c0_1 = arith.constant 0 : index
    %c0_2 = arith.constant 0 : index
    %1 = vector.load %arg2[%c0_1, %c0_2] : memref<8x256xf32, #tpu.memory_space<vmem>>, vector<8x256xf32>
    %cst = arith.constant dense<0.000000e+00> : vector<4x256xf32>
    %2 = tpu.matmul %0, %1, %cst {dimension_numbers = #tpu.dot_dimension_numbers<[1], [0], [0], [1], [0, 0, 1, 1], [], []>} : vector<4x8xf32>, vector<8x256xf32>, vector<4x256xf32> -> vector<4x256xf32>
    %c0_3 = arith.constant 0 : index
    %c0_4 = arith.constant 0 : index
    %3 = vector.load %arg3[%c0_3, %c0_4] : memref<1x256xf32, #tpu.memory_space<vmem>>, vector<1x256xf32>
    %4 = vector.broadcast %3 : vector<1x256xf32> to vector<4x256xf32>
    %5 = arith.addf %2, %4 : vector<4x256xf32>
    %6 = math.tanh %5 : vector<4x256xf32>
    %c0_5 = arith.constant 0 : index
    %c0_6 = arith.constant 0 : index
    %7 = vector.load %arg4[%c0_5, %c0_6] : memref<256x128xf32, #tpu.memory_space<vmem>>, vector<256x128xf32>
    %cst_7 = arith.constant dense<0.000000e+00> : vector<4x128xf32>
    %8 = tpu.matmul %6, %7, %cst_7 {dimension_numbers = #tpu.dot_dimension_numbers<[1], [0], [0], [1], [0, 0, 1, 1], [], []>} : vector<4x256xf32>, vector<256x128xf32>, vector<4x128xf32> -> vector<4x128xf32>
    %c0_8 = arith.constant 0 : index
    %c0_9 = arith.constant 0 : index
    %9 = vector.load %arg5[%c0_8, %c0_9] : memref<1x128xf32, #tpu.memory_space<vmem>>, vector<1x128xf32>
    %10 = vector.broadcast %9 : vector<1x128xf32> to vector<4x128xf32>
    %11 = arith.addf %8, %10 : vector<4x128xf32>
    %12 = vector.extract_strided_slice %11 {offsets = [0, 0], sizes = [4, 10], strides = [1, 1]} : vector<4x128xf32> to vector<4x10xf32>
    %c0_10 = arith.constant 0 : index
    %c0_11 = arith.constant 0 : index
    %13 = vector.load %arg6[%c0_10, %c0_11] : memref<4x10xf32, #tpu.memory_space<vmem>>, vector<4x10xf32>
    tpu.vector_store %arg6[%c0_10, %c0_11], %12 {strides = array<i32>} : memref<4x10xf32, #tpu.memory_space<vmem>>, vector<4x10xf32>,
    %14 = vector.extract_strided_slice %11 {offsets = [0, 10], sizes = [4, 1], strides = [1, 1]} : vector<4x128xf32> to vector<4x1xf32>
    %c0_12 = arith.constant 0 : index
    %c0_13 = arith.constant 0 : index
    %15 = vector.load %arg7[%c0_12, %c0_13] : memref<4x1xf32, #tpu.memory_space<vmem>>, vector<4x1xf32>
    tpu.vector_store %arg7[%c0_12, %c0_13], %14 {strides = array<i32>} : memref<4x1xf32, #tpu.memory_space<vmem>>, vector<4x1xf32>,
    return
  }
  func.func @transform_0(%arg0: i32) -> (i32, i32) {
    %c0_i32 = arith.constant 0 : i32
    %c0_i32_0 = arith.constant 0 : i32
    return %arg0, %c0_i32 : i32, i32
  }
  func.func @transform_1(%arg0: i32) -> (i32, i32) {
    %c0_i32 = arith.constant 0 : i32
    %c0_i32_0 = arith.constant 0 : i32
    %c0_i32_1 = arith.constant 0 : i32
    return %c0_i32, %c0_i32_0 : i32, i32
  }
  func.func @transform_2(%arg0: i32) -> (i32, i32) {
    %c0_i32 = arith.constant 0 : i32
    %c0_i32_0 = arith.constant 0 : i32
    %c0_i32_1 = arith.constant 0 : i32
    return %c0_i32, %c0_i32_0 : i32, i32
  }
  func.func @transform_3(%arg0: i32) -> (i32, i32) {
    %c0_i32 = arith.constant 0 : i32
    %c0_i32_0 = arith.constant 0 : i32
    %c0_i32_1 = arith.constant 0 : i32
    return %c0_i32, %c0_i32_0 : i32, i32
  }
  func.func @transform_4(%arg0: i32) -> (i32, i32) {
    %c0_i32 = arith.constant 0 : i32
    %c0_i32_0 = arith.constant 0 : i32
    %c0_i32_1 = arith.constant 0 : i32
    return %c0_i32, %c0_i32_0 : i32, i32
  }
  func.func @transform_5(%arg0: i32) -> (i32, i32) {
    %c0_i32 = arith.constant 0 : i32
    %c0_i32_0 = arith.constant 0 : i32
    return %arg0, %c0_i32 : i32, i32
  }
  func.func @transform_6(%arg0: i32) -> (i32, i32) {
    %c0_i32 = arith.constant 0 : i32
    %c0_i32_0 = arith.constant 0 : i32
    return %arg0, %c0_i32 : i32, i32
  }
}

</mosaic_0001>

<bundles_post_ra>
// kernel: net_forward.1
= control target key start
LH: loop header
LB: loop body
LE: loop exit
PB: predicated region body
PF: predicated region fallthrough
CT: control target
= control target key end

     0   :  { %12 = vsyncpa [#allocation3], 0  ;;  %s449_s0 = inlined_call_operand.hbm [shape: f32[4,8], index: 0, kind: input, shape index: {}]   ;;  %s450_s1 = inlined_call_operand.hbm [shape: f32[8,256], index: 1, kind: input, shape index: {}]   ;;  %s451_s2 = inlined_call_operand.hbm [shape: f32[1,256], index: 2, kind: input, shape index: {}]   ;;  %s452_s3 = inlined_call_operand.hbm [shape: f32[256,128], index: 3, kind: input, shape index: {}]   ;;  %s453_s4 = inlined_call_operand.vmem [shape: f32[1,128], index: 4, kind: input, shape index: {}]   ;;  %s454_s5 = inlined_call_operand.hbm [shape: f32[4,10], index: 5, kind: output, shape index: {0}]   ;;  %s455_s6 = inlined_call_operand.vmem [shape: f32[4,1], index: 6, kind: output, shape index: {1}]  }
   0x1   :  { %13 = vsyncpa [#allocation6], 0 }
   0x2   :  { %14 = vsyncpa [#allocation9], 0  ;;  %s32_s23 = sshll.u32 %s450_s1, 4  ;;  %s33_s23 = int_to_ptr.hbm [resolvable:$true] %s32_s23 }
   0x3   :  { %15 = vsyncpa [#allocation4], 0  ;;  %s385_s24 = smov [#allocation5]   ;;  %s21_s28 = sshll.u32 %s449_s0, 4  ;;  %s22_s28 = int_to_ptr.hbm [resolvable:$true] %s21_s28 }
   0x4   :  { %s34_s25 = sshll.u32 %s385_s24, 4  ;;  %s386_s29 = smov [#allocation2]   ;;  %s35_s25 = int_to_ptr.vmem [resolvable:$true] %s34_s25 }
   0x5   :  { %37 = dma.hbm_to_vmem [thread:$0]  %s33_s23, 256, %s35_s25, [#allocation6]  }
   0x6   :  { %s23_s30 = sshll.u32 %s386_s29, 4  ;;  %s43_s9 = sshll.u32 %s451_s2, 4  ;;  %s24_s30 = int_to_ptr.vmem [resolvable:$true] %s23_s30  ;;  %s44_s9 = int_to_ptr.hbm [resolvable:$true] %s43_s9 }
   0x7   :  { %26 = dma.hbm_to_vmem [thread:$0]  %s22_s28, 64, %s24_s30, [#allocation3]  }
   0x8   :  { %s53_s11 = sshll.u32 %s452_s3, 4  ;;  %s387_s12 = smov [#allocation7]   ;;  %s54_s11 = int_to_ptr.hbm [resolvable:$true] %s53_s11 }
   0x9   :  { %s45_s13 = sshll.u32 %s387_s12, 4  ;;  %s388_s0 = smov [#allocation8]   ;;  %s46_s13 = int_to_ptr.vmem [resolvable:$true] %s45_s13 }
   0xa   :  { %48 = dma.hbm_to_vmem [thread:$0]  %s44_s9, 32, %s46_s13, [#allocation6]  }
   0xb   :  { %s55_s14 = sshll.u32 %s388_s0, 4  ;;  %s389_s15 = smov 128   ;;  %s56_s14 = int_to_ptr.vmem [resolvable:$true] %s55_s14 }
   0xc   :  { %s390_s16 = smov 8  }
   0xd   :  { %61 = dma.hbm_to_vmem [thread:$0]  %s54_s11, 4096, %s56_s14, [#allocation9], %s389_s15, %s389_s15, %s390_s16  }
   0xe   :  { %377 = dma.done.wait [#allocation3], 64  }
   0xf   :  { %378 = vsyncadd [#allocation3], 4294967232 }
  0x10   :  { %379 = dma.done.wait [#allocation6], 288  }
  0x11   :  { %380 = vsyncadd [#allocation6], 4294967008 }
  0x12   :  { %381 = dma.done.wait [#allocation9], 4096  }
  0x13   :  { %382 = vsyncadd [#allocation9], 4294963200  ;;  %vm89_vm0 = vcmask 64512   ;;  %v81_v0 = vld [vmem:[#allocation5] sm:$0xff]  ;;  %v80_v1 = vld [vmem:[#allocation2] sm:$0xf] }
  0x14   :  { %v82_v2 = vld [vmem:[#allocation5 + $0x8] sm:$0xff]  ;;  %108 = vmatpush.msra.mxu0 %v81_v0  ;;  %v148_v7 = vld [vmem:[#allocation8 + $0x68] sm:$0xff]  ;;  %v147_v9 = vld [vmem:[#allocation8 + $0x60] sm:$0xff]  ;;  %s391_s17 = smov [#allocation10]   ;;  %s226_s21 = sshll.u32 %s454_s5, 4  ;;  %vm211_vm1 = vcmask 76800   ;;  %s227_s21 = int_to_ptr.hbm [resolvable:$true] %s226_s21 }
  0x15   :  { %128 = vmatpush.msra.mxu1 %v82_v2  ;;  %v150_v3 = vld [vmem:[#allocation8 + $0x78] sm:$0xff]  ;;  %242 = vmatmul.msk.f32.vlgmr.msra.gmra.mxu0 %vm89_vm0, %v80_v1  ;;  %v149_v5 = vld [vmem:[#allocation8 + $0x70] sm:$0xff]  ;;  %v164_v8 = vld [vmem:[#allocation8 + $0xe8] sm:$0xff]  ;;  %s224_s18 = sshll.u32 %s391_s17, 4  ;;  %s392_s22 = smov 118   ;;  %vm217_vm2 = vcmask 3072   ;;  %s225_s18 = int_to_ptr.vmem [resolvable:$true] %s224_s18 }
  0x16   :  { %v166_v4 = vld [vmem:[#allocation8 + $0xf8] sm:$0xff]  ;;  %243 = vmatmul.msk.f32.vlgmr.msra.gmra.mxu1 %vm89_vm0, %v80_v1  ;;  %v165_v6 = vld [vmem:[#allocation8 + $0xf0] sm:$0xff]  ;;  %171 = vmatpush.msra.mxu2 %v150_v3  ;;  %v163_v10 = vld [vmem:[#allocation8 + $0xe0] sm:$0xff] }
  0x17   :  { %191 = vmatpush.msra.mxu3 %v166_v4  ;;  %v146_v11 = vld [vmem:[#allocation8 + $0x58] sm:$0xff]  ;;  %v145_v13 = vld [vmem:[#allocation8 + $0x50] sm:$0xff]  ;;  %v144_v15 = vld [vmem:[#allocation8 + $0x48] sm:$0xff] }
  0x18   :  { %172 = vmatpush.msra.mxu2 %v149_v5  ;;  %v162_v12 = vld [vmem:[#allocation8 + $0xd8] sm:$0xff]  ;;  %v161_v14 = vld [vmem:[#allocation8 + $0xd0] sm:$0xff]  ;;  %v160_v16 = vld [vmem:[#allocation8 + $0xc8] sm:$0xff] }
  0x19   :  { %192 = vmatpush.msra.mxu3 %v165_v6  ;;  %v143_v17 = vld [vmem:[#allocation8 + $0x40] sm:$0xff]  ;;  %v142_v19 = vld [vmem:[#allocation8 + $0x38] sm:$0xff]  ;;  %v141_v21 = vld [vmem:[#allocation8 + $0x30] sm:$0xff] }
  0x1a   :  { %173 = vmatpush.msra.mxu2 %v148_v7  ;;  %v159_v18 = vld [vmem:[#allocation8 + $0xc0] sm:$0xff]  ;;  %v158_v20 = vld [vmem:[#allocation8 + $0xb8] sm:$0xff]  ;;  %v157_v22 = vld [vmem:[#allocation8 + $0xb0] sm:$0xff] }
  0x1b   :  { %193 = vmatpush.msra.mxu3 %v164_v8  ;;  %v140_v23 = vld [vmem:[#allocation8 + $0x28] sm:$0xff]  ;;  %v139_v24 = vld [vmem:[#allocation8 + $0x20] sm:$0xff]  ;;  %v138_v26 = vld [vmem:[#allocation8 + $0x18] sm:$0xff] }
  0x1c   :  { %174 = vmatpush.msra.mxu2 %v147_v9  ;;  %v156_v25 = vld [vmem:[#allocation8 + $0xa8] sm:$0xff]  ;;  %v155_v27 = vld [vmem:[#allocation8 + $0xa0] sm:$0xff]  ;;  %v137_v28 = vld [vmem:[#allocation8 + $0x10] sm:$0xff] }
  0x1d   :  { %194 = vmatpush.msra.mxu3 %v163_v10  ;;  %v154_v29 = vld [vmem:[#allocation8 + $0x98] sm:$0xff]  ;;  %v136_v30 = vld [vmem:[#allocation8 + $0x8] sm:$0xff]  ;;  %v153_v31 = vld [vmem:[#allocation8 + $0x90] sm:$0xff] }
  0x1e   :  { %175 = vmatpush.msra.mxu2 %v146_v11  ;;  %v135_v32 = vld [vmem:[#allocation8] sm:$0xff]  ;;  %v152_v33 = vld [vmem:[#allocation8 + $0x88] sm:$0xff]  ;;  %v83_v35 = vld [vmem:[#allocation7] sm:$0x3] }
  0x1f   :  { %195 = vmatpush.msra.mxu3 %v162_v12  ;;  %v151_v34 = vld [vmem:[#allocation8 + $0x80] sm:$0xff]  ;;  %v85_v36 = vperm.slane %v83_v35, 0  ;;  %v86_v37 = vperm.slane %v83_v35, 1  ;;  %v252_v44 = vld [vmem:[%s453_s4] ss:$0 sm:$0xff] }
  0x20   :  { %176 = vmatpush.msra.mxu2 %v145_v13 }
  0x21   :  { %196 = vmatpush.msra.mxu3 %v161_v14 }
  0x22   :  { %177 = vmatpush.msra.mxu2 %v144_v15 }
  0x23   :  { %197 = vmatpush.msra.mxu3 %v160_v16 }
  0x24   :  { %178 = vmatpush.msra.mxu2 %v143_v17 }
  0x25   :  { %198 = vmatpush.msra.mxu3 %v159_v18 }
  0x26   :  { %179 = vmatpush.msra.mxu2 %v142_v19 }
  0x27   :  { %199 = vmatpush.msra.mxu3 %v158_v20 }
  0x28   :  { %180 = vmatpush.msra.mxu2 %v141_v21 }
  0x29   :  { %200 = vmatpush.msra.mxu3 %v157_v22 }
  0x2a   :  { %181 = vmatpush.msra.mxu2 %v140_v23 }
  0x2b   :  { %201 = vmatpush.msra.mxu3 %v156_v25 }
  0x2c   :  { %182 = vmatpush.msra.mxu2 %v139_v24 }
  0x2d   :  { %202 = vmatpush.msra.mxu3 %v155_v27 }
  0x2e   :  { %183 = vmatpush.msra.mxu2 %v138_v26 }
  0x2f   :  { %203 = vmatpush.msra.mxu3 %v154_v29 }
  0x30   :  { %184 = vmatpush.msra.mxu2 %v137_v28 }
  0x31   :  { %204 = vmatpush.msra.mxu3 %v153_v31 }
  0x32   :  { %185 = vmatpush.msra.mxu2 %v136_v30 }
  0x33   :  { %205 = vmatpush.msra.mxu3 %v152_v33 }
  0x34   :  { %186 = vmatpush.msra.mxu2 %v135_v32 }
  0x35   :  { %206 = vmatpush.msra.mxu3 %v151_v34 }
  0x92   :  { %v110_v38 = vpop.f32.mrf.mxu0 }
  0x93   :  { %v130_v39 = vpop.f32.mrf.mxu1  ;;  %v111_v40 = vadd.f32 %v110_v38, %v85_v36 }
  0x94   :  { %v131_v41 = vadd.f32 %v130_v39, %v86_v37 }
  0x95   :  { %253 = vtanh.f32 %v111_v40 }
  0x96   :  { %255 = vtanh.f32 %v131_v41 }
  0x9b   :  { %v254_v42 = vpop.eup %253 }
  0x9c   :  { %v256_v43 = vpop.eup %255  ;;  %187 = vmatmul.f32.vlgmr.msra.gmra.mxu2 %v254_v42 }
  0x9d   :  { %207 = vmatmul.f32.vlgmr.msra.gmra.mxu3 %v256_v43 }
 0x11f   :  { %v188_v45 = vpop.f32.mrf.mxu2 }
 0x120   :  { %v189_v46 = vadd.f32 %v252_v44, %v188_v45  ;;  %v208_v47 = vpop.f32.mrf.mxu3 }
 0x122   :  { %v209_v48 = vadd.f32 %v208_v47, %v189_v46 }
 0x124   :  { %214 = vrot.lane.b32.xlu0 %v209_v48, %s392_s22  ;;  %212 = vst.msk [vmem:[#allocation10] sm:$0xf] %vm211_vm1, %v209_v48 }
 0x125   :  { %229 = dma.vmem_to_hbm [thread:$0]  %s225_s18, 64, %s227_s21, [#allocation4]  }
 0x196   :  { %v215_v49 = vpop.permute.xlu0 %214 }
 0x197   :  { %218 = vst.msk [vmem:[%s455_s6] sm:$0xf] %vm217_vm2, %v215_v49 }
 0x198   :  { %383 = dma.done.wait [#allocation4], 64  }
 0x199   :  { %384 = vsyncadd [#allocation4], 4294967232 }
 0x19a   :  { %238 = vsyncpa [#allocation3], 1 }
 0x19b   :  { %239 = vsyncpa [#allocation6], 1 }
 0x19c   :  { %240 = vsyncpa [#allocation9], 1 }
 0x19d   :  { %241 = vsyncpa [#allocation4], 1 }

</bundles_post_ra>
